<compile_context>
chip_gen: v5e
topology: v5e:2x2
jax: 0.10.0
libtpu: 0.0.40
codegen_flags: <defaults>
</compile_context>

<pallas_src>
import functools

import jax
import jax.numpy as jnp
from jax.experimental import pallas as pl
from jax.experimental.pallas import tpu as pltpu

MAX_LOGSTD = 10.0
LANE = 128          # TPU lane width / packed slab width


def _round_up(n, m):
    return (n + m - 1) // m * m


def _pad2(a, rows, cols):
    r, c = a.shape
    return jnp.pad(a, ((0, rows - r), (0, cols - c)))


def _pick_tile(limit, total):
    """Largest multiple of LANE that divides `total` and is <= max(limit, LANE)."""
    t = max(LANE, min(limit, total)) // LANE * LANE
    while total % t:
        t -= LANE
    return t


# --------------------------------------------------------------------------- #
# Pass 1: HW = relu(A @ XW + b1) @ W_heads        (tiled row x k blocks)       #
#   XW = X @ W1 is precomputed (hoisted) in the wrapper.                       #
# --------------------------------------------------------------------------- #
def _propagate_hidden_kernel(a_ref, xw_ref, b1_ref, wheads_ref, hw_ref, acc_ref):
    k = pl.program_id(1)

    @pl.when(k == 0)
    def _init():
        acc_ref[...] = jnp.zeros_like(acc_ref)

    acc_ref[...] += jnp.dot(a_ref[...], xw_ref[...],
                            preferred_element_type=jnp.float32)

    @pl.when(k == pl.num_programs(1) - 1)
    def _finalize():
        h1 = jnp.maximum(acc_ref[...] + b1_ref[...], 0.0)          # f32 relu
        hw_ref[...] = jnp.dot(h1.astype(jnp.bfloat16), wheads_ref[...],
                              preferred_element_type=jnp.float32
                              ).astype(hw_ref.dtype)


# --------------------------------------------------------------------------- #
# Pass 2: slab = A @ HW + bias  -> clamp / reparametrize / po head / pack      #
#   Accumulates directly into the f32 output block (resident across k).       #
# --------------------------------------------------------------------------- #
def _propagate_heads_kernel(a_ref, hw_ref, hbias_ref, eps_ref, coords_ref,
                            wc_ref, bc_ref, out_ref, *, z_dim):
    k = pl.program_id(1)

    @pl.when(k == 0)
    def _init():
        out_ref[...] = jnp.zeros_like(out_ref)

    out_ref[...] += jnp.dot(a_ref[...], hw_ref[...],
                            preferred_element_type=jnp.float32)

    @pl.when(k == pl.num_programs(1) - 1)
    def _finalize():
        heads = out_ref[...] + hbias_ref[...]                      # f32 (TM, 128)
        col = jax.lax.broadcasted_iota(jnp.int32, heads.shape, 1)

        # logstd.clamp(max=MAX_LOGSTD) on the logstd columns only.
        is_logstd = (col >= 2 * z_dim) & (col < 3 * z_dim)
        heads = jnp.where(is_logstd, jnp.minimum(heads, MAX_LOGSTD), heads)

        # reparametrize: z = mu + eps * exp(logstd).
        # eps was packed by the wrapper at the logstd columns [2Z, 3Z), so
        # noise = eps * exp(heads) is nonzero only there.  A tiny static
        # selection matmul then shifts it onto the z columns [0, Z).  The
        # global min with MAX_LOGSTD keeps exp() finite on the non-logstd
        # columns (where eps is zero) so no inf*0 NaNs reach the matmul.
        noise = eps_ref[...] * jnp.exp(jnp.minimum(heads, MAX_LOGSTD))
        row2 = jax.lax.broadcasted_iota(jnp.int32, (LANE, LANE), 0)
        col2 = jax.lax.broadcasted_iota(jnp.int32, (LANE, LANE), 1)
        shift = ((row2 == col2 + 2 * z_dim) & (col2 < z_dim)).astype(jnp.float32)
        slab = heads + jnp.dot(noise, shift, preferred_element_type=jnp.float32)

        # coords -> po_emb head: K=3 is far too small for the MXU; 3 VPU FMAs.
        coords = coords_ref[...].astype(jnp.float32)
        wc = wc_ref[...]
        po = bc_ref[...] + coords[:, 0:1] * wc[0:1, :]
        for c in range(1, coords.shape[1]):
            po = po + coords[:, c:c + 1] * wc[c:c + 1, :]
        slab = slab + jnp.maximum(po, 0.0)            # wc/bc zero outside [3Z, 4Z)

        out_ref[...] = slab


def vgae_forward(x, a_norm, coords, eps, params, *, block=512, block_k=None):
    """Tiled Pallas VGAE encode.  Returns (z, mu, logstd, po_emb).

    `a_norm` may be passed already padded to (N_pad, N_pad) bf16 (preferred,
    avoids a per-forward pad+cast over the N^2 matrix) or unpadded f32.
    """
    N, F = x.shape
    HID = params["w1"].shape[1]
    Z = params["wmu"].shape[1]
    C = coords.shape[1]

    assert block % LANE == 0, "block must be a multiple of 128"
    # Packed-slab layout: z | mu | logstd | po_emb must fit in one 128 lanes.
    # TODO(synk): zdim > 32 needs a wider (256-lane) packing slab.
    assert 4 * Z <= LANE

    N_pad = _round_up(N, LANE)
    FP = _round_up(F, LANE)
    HIDP = _round_up(HID, LANE)

    # Row-block tile: keep NI >= 2 when the graph allows so v7x's two
    # TensorCores both get work along the "parallel" grid axis.
    TM = _pick_tile(min(block, max(LANE, N_pad // 2)), N_pad)
    # Contraction tile: larger (asymmetric) k tiles amortize per-step overhead.
    TK = _pick_tile(block_k if block_k is not None else 2 * block, N_pad)
    NI, NK = N_pad // TM, N_pad // TK

    bf16 = jnp.bfloat16

    if a_norm.shape == (N_pad, N_pad) and a_norm.dtype == bf16:
        a_bf = a_norm                                   # already kernel-ready
    else:
        a_bf = _pad2(a_norm.astype(jnp.float32), N_pad, N_pad).astype(bf16)

    # Hoisted X @ W1 (tiny vs. the N^2 A-matmuls; previously recomputed inside
    # pass 1 for every (row-block, k) grid step).
    x_bf = _pad2(x, N_pad, FP).astype(bf16)
    w1_bf = _pad2(params["w1"], FP, HIDP).astype(bf16)
    xw_bf = jnp.dot(x_bf, w1_bf, preferred_element_type=jnp.float32).astype(bf16)

    b1_pad = _pad2(params["b1"], 1, HIDP)                        # f32
    coords_pad = _pad2(coords, N_pad, C)                         # f32

    # Fused head weight / bias slabs (see packed layout at top of file).
    wheads = jnp.zeros((HIDP, LANE), jnp.float32)
    wheads = wheads.at[:HID, 0 * Z:1 * Z].set(params["wmu"])     # -> z column
    wheads = wheads.at[:HID, 1 * Z:2 * Z].set(params["wmu"])     # -> mu
    wheads = wheads.at[:HID, 2 * Z:3 * Z].set(params["wls"])     # -> logstd
    wheads_bf = wheads.astype(bf16)

    hbias = jnp.zeros((1, LANE), jnp.float32)
    hbias = hbias.at[0, 0 * Z:1 * Z].set(params["bmu"][0])
    hbias = hbias.at[0, 1 * Z:2 * Z].set(params["bmu"][0])
    hbias = hbias.at[0, 2 * Z:3 * Z].set(params["bls"][0])

    wc_pad = jnp.zeros((C, LANE), jnp.float32).at[:, 3 * Z:4 * Z].set(params["wc"])
    bc_pad = jnp.zeros((1, LANE), jnp.float32).at[0, 3 * Z:4 * Z].set(params["bc"][0])

    # torch.randn_like noise, packed lane-dense at the logstd columns [2Z, 3Z).
    # TODO(synk): generate in-kernel via pltpu.prng_seed/stateful_normal to drop
    # this HBM stream (kept as an explicit input for deterministic checking).
    eps_slab = jnp.zeros((N_pad, LANE), jnp.float32).at[:N, 2 * Z:3 * Z].set(eps)

    compiler_params = pltpu.CompilerParams(
        dimension_semantics=("parallel", "arbitrary"),
        # Within v7x's 64 MiB physical VMEM; actual use at block=512 is a few MiB.
        vmem_limit_bytes=48 * 1024 * 1024)

    # ---- pass 1: HW = relu(A @ XW + b1) @ W_heads -------------------------- #
    cost1 = pl.CostEstimate(
        flops=2 * N_pad * N_pad * HIDP + 2 * N_pad * HIDP * LANE,
        transcendentals=0,
        bytes_accessed=(2 * N_pad * N_pad + 2 * NI * N_pad * HIDP
                        + 2 * HIDP * LANE + 4 * HIDP + 2 * N_pad * LANE))
    hw = pl.pallas_call(
        _propagate_hidden_kernel,
        out_shape=jax.ShapeDtypeStruct((N_pad, LANE), bf16),
        grid_spec=pltpu.PrefetchScalarGridSpec(
            num_scalar_prefetch=0,
            grid=(NI, NK),
            in_specs=[
                pl.BlockSpec((TM, TK), lambda i, k: (i, k)),       # A (bf16)
                pl.BlockSpec((TK, HIDP), lambda i, k: (k, 0)),     # XW (bf16)
                pl.BlockSpec((1, HIDP), lambda i, k: (0, 0)),      # b1
                pl.BlockSpec((HIDP, LANE), lambda i, k: (0, 0)),   # W_heads
            ],
            out_specs=pl.BlockSpec((TM, LANE), lambda i, k: (i, 0)),
            scratch_shapes=[pltpu.VMEM((TM, HIDP), jnp.float32)],
        ),
        compiler_params=compiler_params,
        cost_estimate=cost1,
    )(a_bf, xw_bf, b1_pad, wheads_bf)

    # ---- pass 2: slab = A @ HW + bias -> clamp / reparametrize / po / pack - #
    cost2 = pl.CostEstimate(
        flops=(2 * N_pad * N_pad * LANE + 2 * N_pad * LANE * LANE
               + 16 * N_pad * LANE),
        transcendentals=N_pad * LANE,
        bytes_accessed=(2 * N_pad * N_pad + 2 * NI * N_pad * LANE
                        + 4 * N_pad * LANE + 4 * N_pad * C + 4 * N_pad * LANE))
    out = pl.pallas_call(
        functools.partial(_propagate_heads_kernel, z_dim=Z),
        out_shape=jax.ShapeDtypeStruct((N_pad, LANE), jnp.float32),
        grid_spec=pltpu.PrefetchScalarGridSpec(
            num_scalar_prefetch=0,
            grid=(NI, NK),
            in_specs=[
                pl.BlockSpec((TM, TK), lambda i, k: (i, k)),       # A (bf16)
                pl.BlockSpec((TK, LANE), lambda i, k: (k, 0)),     # HW (bf16)
                pl.BlockSpec((1, LANE), lambda i, k: (0, 0)),      # head bias
                pl.BlockSpec((TM, LANE), lambda i, k: (i, 0)),     # eps slab
                pl.BlockSpec((TM, C), lambda i, k: (i, 0)),        # coords
                pl.BlockSpec((C, LANE), lambda i, k: (0, 0)),      # Wc (padded)
                pl.BlockSpec((1, LANE), lambda i, k: (0, 0)),      # bc (padded)
            ],
            out_specs=pl.BlockSpec((TM, LANE), lambda i, k: (i, 0)),
        ),
        compiler_params=compiler_params,
        cost_estimate=cost2,
    )(a_bf, hw, hbias, eps_slab, coords_pad, wc_pad, bc_pad)

    z = out[:N, 0 * Z:1 * Z]
    mu = out[:N, 1 * Z:2 * Z]
    logstd = out[:N, 2 * Z:3 * Z]
    po_emb = out[:N, 3 * Z:4 * Z]
    return z, mu, logstd, po_emb


def vgae_reference(x, a_norm, coords, eps, params):
    """Pure-JAX reference with the same bf16-input / f32-accumulate casts."""
    bf, f32 = jnp.bfloat16, jnp.float32
    a = a_norm.astype(bf)
    xw = jnp.dot(x.astype(bf), params["w1"].astype(bf), preferred_element_type=f32)
    h1 = jnp.maximum(
        jnp.dot(a, xw.astype(bf), preferred_element_type=f32) + params["b1"], 0.0)
    h1 = h1.astype(bf)
    hw_mu = jnp.dot(h1, params["wmu"].astype(bf), preferred_element_type=f32).astype(bf)
    hw_ls = jnp.dot(h1, params["wls"].astype(bf), preferred_element_type=f32).astype(bf)
    mu = jnp.dot(a, hw_mu, preferred_element_type=f32) + params["bmu"]
    logstd = jnp.minimum(
        jnp.dot(a, hw_ls, preferred_element_type=f32) + params["bls"], MAX_LOGSTD)
    po = jnp.maximum(coords @ params["wc"] + params["bc"], 0.0)
    z = mu + eps * jnp.exp(logstd)
    return z, mu, logstd, po


def build_normalized_adjacency(edge_index, num_nodes, pad_to=None,
                               dtype=jnp.bfloat16):
    """Dense GCN-normalized adjacency D^-1/2 (A + I) D^-1/2 (plain-JAX glue).

    Built directly at the kernel's padded shape / dtype so the per-forward
    pad+cast over the N^2 matrix is amortized away.
    """
    a = jnp.zeros((num_nodes, num_nodes), jnp.float32)
    a = a.at[edge_index[0], edge_index[1]].set(1.0)
    a = a.at[edge_index[1], edge_index[0]].set(1.0)                 # symmetrize
    a = a.at[jnp.arange(num_nodes), jnp.arange(num_nodes)].set(1.0)  # self loops
    deg = a.sum(axis=1)
    dinv = jax.lax.rsqrt(jnp.maximum(deg, 1e-12))
    a = dinv[:, None] * a * dinv[None, :]
    if pad_to is not None:
        a = _pad2(a, pad_to, pad_to)
    return a.astype(dtype)


if __name__ == "__main__":
    key = jax.random.PRNGKey(0)
    N, FEAT, HID, ZDIM, CDIM, E = 200, 32, 64, 16, 3, 800

    ks = jax.random.split(key, 12)
    x = jax.random.normal(ks[0], (N, FEAT), jnp.float32)
    coords = jax.random.normal(ks[1], (N, CDIM), jnp.float32)
    edge_index = jax.random.randint(ks[2], (2, E), 0, N)

    N_pad = _round_up(N, LANE)
    a_bf = build_normalized_adjacency(edge_index, N, pad_to=N_pad)   # padded bf16

    def glorot(k, shape):
        scale = jnp.sqrt(2.0 / (shape[0] + shape[1]))
        return scale * jax.random.normal(k, shape, jnp.float32)

    params = {
        "w1": glorot(ks[3], (FEAT, HID)),
        "b1": 0.1 * jax.random.normal(ks[4], (1, HID), jnp.float32),
        "wmu": glorot(ks[5], (HID, ZDIM)),
        "bmu": 0.1 * jax.random.normal(ks[6], (1, ZDIM), jnp.float32),
        "wls": glorot(ks[7], (HID, ZDIM)),
        "bls": 0.1 * jax.random.normal(ks[8], (1, ZDIM), jnp.float32),
        "wc": glorot(ks[9], (CDIM, ZDIM)),
        "bc": 0.1 * jax.random.normal(ks[10], (1, ZDIM), jnp.float32),
        # fde1/fde2 (feature_decoder) exist in __init__ but are unused by forward.
    }

    # Deterministic stand-in for torch.randn_like (training-mode reparametrize).
    eps = jax.random.normal(ks[11], (N, ZDIM), jnp.float32)

    # block=block_k=128 so the 200-node toy graph (N_pad=256) exercises a 2x2
    # grid with multi-step k accumulation (real graphs: use the defaults).
    z1, mu, logstd, po_emb = vgae_forward(x, a_bf, coords, eps, params,
                                          block=128, block_k=128)
    jax.block_until_ready(z1)

    z_r, mu_r, ls_r, po_r = vgae_reference(x, a_bf[:N, :N], coords, eps, params)

    assert z1.shape == (N, ZDIM) and mu.shape == (N, ZDIM)
    assert logstd.shape == (N, ZDIM) and po_emb.shape == (N, ZDIM)
    for got, want in ((z1, z_r), (mu, mu_r), (logstd, ls_r), (po_emb, po_r)):
        assert bool(jnp.all(jnp.isfinite(got)))
        assert bool(jnp.allclose(got, want, atol=1e-2, rtol=1e-2))
    print("KERNEL_OK")
</pallas_src>

<mosaic_0001>
module attributes {stable_mosaic.version = 11 : i64} {
  func.func @_propagate_hidden_kernel(%arg0: i32, %arg1: i32, %arg2: memref<128x128xbf16, #tpu.memory_space<vmem>>, %arg3: memref<128x128xbf16, #tpu.memory_space<vmem>>, %arg4: memref<1x128xf32, #tpu.memory_space<vmem>>, %arg5: memref<128x128xbf16, #tpu.memory_space<vmem>>, %arg6: memref<128x128xbf16, #tpu.memory_space<vmem>>, %arg7: memref<128x128xf32, #tpu.memory_space<vmem>>) attributes {dimension_semantics = [#tpu.dimension_semantics<parallel>, #tpu.dimension_semantics<arbitrary>], iteration_bounds = array<i64: 2, 2>, scalar_prefetch = 0 : i64, scratch_operands = 1 : i64, tpu.core_type = #tpu.core_type<tc>, window_params = [{transform_indices = @transform_0, window_bounds = array<i64: 128, 128>}, {transform_indices = @transform_1, window_bounds = array<i64: 128, 128>}, {pipeline_mode = #tpu.pipeline_mode<synchronous>, transform_indices = @transform_2, window_bounds = array<i64: 1, 128>}, {pipeline_mode = #tpu.pipeline_mode<synchronous>, transform_indices = @transform_3, window_bounds = array<i64: 128, 128>}, {transform_indices = @transform_4, window_bounds = array<i64: 128, 128>}]} {
    %c0_i32 = arith.constant 0 : i32
    %0 = arith.cmpi eq, %arg1, %c0_i32 : i32
    %1 = arith.extui %0 : i1 to i32
    %c0_i32_0 = arith.constant 0 : i32
    %2 = arith.cmpi ne, %1, %c0_i32_0 : i32
    scf.if %2 {
      %cst_9 = arith.constant 0.000000e+00 : f32
      %12 = vector.broadcast %cst_9 : f32 to vector<128x128xf32>
      %c0_10 = arith.constant 0 : index
      %c0_11 = arith.constant 0 : index
      %13 = vector.load %arg7[%c0_10, %c0_11] : memref<128x128xf32, #tpu.memory_space<vmem>>, vector<128x128xf32>
      tpu.vector_store %arg7[%c0_10, %c0_11], %12 {strides = array<i32>} : memref<128x128xf32, #tpu.memory_space<vmem>>, vector<128x128xf32>,
    } else {
    }
    %c0 = arith.constant 0 : index
    %c0_1 = arith.constant 0 : index
    %3 = vector.load %arg7[%c0, %c0_1] : memref<128x128xf32, #tpu.memory_space<vmem>>, vector<128x128xf32>
    %c0_2 = arith.constant 0 : index
    %c0_3 = arith.constant 0 : index
    %4 = vector.load %arg2[%c0_2, %c0_3] : memref<128x128xbf16, #tpu.memory_space<vmem>>, vector<128x128xbf16>
    %c0_4 = arith.constant 0 : index
    %c0_5 = arith.constant 0 : index
    %5 = vector.load %arg3[%c0_4, %c0_5] : memref<128x128xbf16, #tpu.memory_space<vmem>>, vector<128x128xbf16>
    %cst = arith.constant dense<0.000000e+00> : vector<128x128xf32>
    %6 = tpu.matmul %4, %5, %cst {dimension_numbers = #tpu.dot_dimension_numbers<[1], [0], [0], [1], [0, 0, 1, 1], [], []>} : vector<128x128xbf16>, vector<128x128xbf16>, vector<128x128xf32> -> vector<128x128xf32>
    %7 = arith.addf %3, %6 : vector<128x128xf32>
    %c0_6 = arith.constant 0 : index
    %c0_7 = arith.constant 0 : index
    %8 = vector.load %arg7[%c0_6, %c0_7] : memref<128x128xf32, #tpu.memory_space<vmem>>, vector<128x128xf32>
    tpu.vector_store %arg7[%c0_6, %c0_7], %7 {strides = array<i32>} : memref<128x128xf32, #tpu.memory_space<vmem>>, vector<128x128xf32>,
    %c1_i32 = arith.constant 1 : i32
    %9 = arith.cmpi eq, %arg1, %c1_i32 : i32
    %10 = arith.extui %9 : i1 to i32
    %c0_i32_8 = arith.constant 0 : i32
    %11 = arith.cmpi ne, %10, %c0_i32_8 : i32
    scf.if %11 {
      %c0_9 = arith.constant 0 : index
      %c0_10 = arith.constant 0 : index
      %12 = vector.load %arg7[%c0_9, %c0_10] : memref<128x128xf32, #tpu.memory_space<vmem>>, vector<128x128xf32>
      %c0_11 = arith.constant 0 : index
      %c0_12 = arith.constant 0 : index
      %13 = vector.load %arg4[%c0_11, %c0_12] : memref<1x128xf32, #tpu.memory_space<vmem>>, vector<1x128xf32>
      %14 = vector.broadcast %13 : vector<1x128xf32> to vector<128x128xf32>
      %15 = arith.addf %12, %14 : vector<128x128xf32>
      %cst_13 = arith.constant 0.000000e+00 : f32
      %16 = vector.broadcast %cst_13 : f32 to vector<128x128xf32>
      %17 = arith.maximumf %15, %16 : vector<128x128xf32>
      %18 = arith.truncf %17 : vector<128x128xf32> to vector<128x128xbf16>
      %c0_14 = arith.constant 0 : index
      %c0_15 = arith.constant 0 : index
      %19 = vector.load %arg5[%c0_14, %c0_15] : memref<128x128xbf16, #tpu.memory_space<vmem>>, vector<128x128xbf16>
      %cst_16 = arith.constant dense<0.000000e+00> : vector<128x128xf32>
      %20 = tpu.matmul %18, %19, %cst_16 {dimension_numbers = #tpu.dot_dimension_numbers<[1], [0], [0], [1], [0, 0, 1, 1], [], []>} : vector<128x128xbf16>, vector<128x128xbf16>, vector<128x128xf32> -> vector<128x128xf32>
      %21 = arith.truncf %20 : vector<128x128xf32> to vector<128x128xbf16>
      %c0_17 = arith.constant 0 : index
      %c0_18 = arith.constant 0 : index
      %22 = vector.load %arg6[%c0_17, %c0_18] : memref<128x128xbf16, #tpu.memory_space<vmem>>, vector<128x128xbf16>
      tpu.vector_store %arg6[%c0_17, %c0_18], %21 {strides = array<i32>} : memref<128x128xbf16, #tpu.memory_space<vmem>>, vector<128x128xbf16>,
    } else {
    }
    return
  }
  func.func @transform_0(%arg0: i32, %arg1: i32) -> (i32, i32) {
    %c0_i32 = arith.constant 0 : i32
    return %arg0, %arg1 : i32, i32
  }
  func.func @transform_1(%arg0: i32, %arg1: i32) -> (i32, i32) {
    %c0_i32 = arith.constant 0 : i32
    %c0_i32_0 = arith.constant 0 : i32
    return %arg1, %c0_i32 : i32, i32
  }
  func.func @transform_2(%arg0: i32, %arg1: i32) -> (i32, i32) {
    %c0_i32 = arith.constant 0 : i32
    %c0_i32_0 = arith.constant 0 : i32
    %c0_i32_1 = arith.constant 0 : i32
    return %c0_i32, %c0_i32_0 : i32, i32
  }
  func.func @transform_3(%arg0: i32, %arg1: i32) -> (i32, i32) {
    %c0_i32 = arith.constant 0 : i32
    %c0_i32_0 = arith.constant 0 : i32
    %c0_i32_1 = arith.constant 0 : i32
    return %c0_i32, %c0_i32_0 : i32, i32
  }
  func.func @transform_4(%arg0: i32, %arg1: i32) -> (i32, i32) {
    %c0_i32 = arith.constant 0 : i32
    %c0_i32_0 = arith.constant 0 : i32
    return %arg0, %c0_i32 : i32, i32
  }
}

</mosaic_0001>

<bundles_post_ra>
// kernel: tpu_custom_call.1
= control target key start
LH: loop header
LB: loop body
LE: loop exit
PB: predicated region body
PF: predicated region fallthrough
CT: control target
= control target key end

     0   :  { %s1874_s0 = inlined_call_operand.hbm [shape: bf16[256,256], index: 0, kind: input, shape index: {}]   ;;  %s1875_s1 = inlined_call_operand.hbm [shape: bf16[256,128], index: 1, kind: input, shape index: {}]   ;;  %s1876_s2 = inlined_call_operand.vmem [shape: f32[1,128], index: 2, kind: input, shape index: {}]   ;;  %s1877_s3 = inlined_call_operand.hbm [shape: bf16[128,128], index: 3, kind: input, shape index: {}]   ;;  %s1878_s4 = inlined_call_operand.hbm [shape: bf16[256,128], index: 4, kind: output, shape index: {}]  }
   0x1   :  { %1893 = sst [smem:[#allocation25_spill]] %s1874_s0 }
   0x2   :  { %1894 = sst [smem:[#allocation26_spill]] %s1876_s2 }
   0x3   :  { %1895 = sst [smem:[#allocation27_spill]] %s1877_s3 }
   0x4   :  { %1896 = sst [smem:[#allocation28_spill]] %s1878_s4 }
   0x5   :  { %9 = vsyncpa [#allocation4], 0 }
   0x6   :  { %11 = vsyncpa [#allocation4 + $0x1], 0 }
   0x7   :  { %12 = vsyncpa [#allocation7], 0 }
   0x8   :  { %14 = vsyncpa [#allocation7 + $0x1], 0 }
   0x9   :  { %15 = vsyncpa [#allocation5], 0 }
   0xa   :  { %17 = vsyncpa [#allocation5 + $0x1], 0  ;;  %s1552_s15 = smov 0   ;;  %s1554_s16 = smov 0  }
   0xb   :  { %s1556_s17 = smov 0   ;;  %s1558_s18 = smov 0  }
   0xc   :  { %s1560_s19 = smov 0   ;;  %s1562_s20 = smov 0  }
   0xd   :  { %s1564_s21 = smov 0   ;;  %s1566_s22 = smov 0  }
   0xe   :  { %s1568_s23 = smov 0   ;;  %s1570_s24 = smov 0  }
   0xf   :  { %s1572_s25 = smov 0   ;;  %s1574_s26 = smov 0  }
  0x10   :  { %s1576_s27 = smov 0   ;;  %s1578_s28 = smov 0  }
  0x11 LB: > { %1897 = sst [smem:[#allocation14_spill]] %s1466_s15  ;;  %s1619_s29 = sadd.s32 4294967295, %s1518_s28   ;;  %s1518_s28 = sphi %s1578_s28, %s23_s28   ;;  %s1514_s27 = sphi %s1576_s27, %s1942_s27   ;;  %s1510_s26 = sphi %s1574_s26, %s1941_s26   ;;  %s1506_s25 = sphi %s1572_s25, %s1940_s25   ;;  %s1502_s24 = sphi %s1570_s24, %s1939_s24   ;;  %s1498_s23 = sphi %s1568_s23, %s1928_s23   ;;  %s1494_s22 = sphi %s1566_s22, %s1938_s22   ;;  %s1490_s21 = sphi %s1564_s21, %s1937_s21   ;;  %s1486_s20 = sphi %s1562_s20, %s1936_s20   ;;  %s1482_s19 = sphi %s1560_s19, %s1935_s19   ;;  %s1478_s18 = sphi %s1558_s18, %s1934_s18   ;;  %s1474_s17 = sphi %s1556_s17, %s1926_s17   ;;  %s1470_s16 = sphi %s1554_s16, %s1933_s16   ;;  %s1466_s15 = sphi %s1552_s15, %s1932_s15  }
  0x12   : > { %1898 = sst [smem:[#allocation15_spill]] %s1474_s17  ;;  %s884_s30 = sadd.s32 4294967294, %s1518_s28  }
  0x13   : > { %1899 = sst [smem:[#allocation16_spill]] %s1498_s23  ;;  %p57_p0 = scmp.ne.s32.totalorder %s1494_s22, %s1490_s21 }
  0x14   : > { %1900 = sst [smem:[#allocation17_spill]] %s1506_s25  ;;  %p58_p1 = scmp.eq.s32.totalorder %s1619_s29, 0 }
  0x15   : > { %1901 = sst [smem:[#allocation18_spill]] %s1514_s27  ;;  %p83_p2 = scmp.ne.s32.totalorder %s1482_s19, %s1478_s18 }
  0x16   : > { %p148_p3 = scmp.ne.s32.totalorder %s1474_s17, %s1470_s16  ;;  %p1629_p4 = por %p58_p1, %p57_p0 }
  0x17   : > { %p149_p5 = scmp.eq.s32.totalorder %s1619_s29, 3  ;;  %p1636_p6 = por %p83_p2, %p58_p1 }
  0x18   : > { %p154_p7 = scmp.ne.s32.totalorder %s1470_s16, %s1466_s15  ;;  %p155_p9 = scmp.eq.s32.totalorder %s884_s30, 3 }
  0x19   : > { %p1642_p8 = por %p149_p5, %p148_p3  ;;  %p885_p10 = scmp.ge.s32.totalorder %s1518_s28, 1 }
  0x1a   : > { %p162_p11 = scmp.lt.s32.totalorder %s1518_s28, 5  ;;  %p1648_p12 = por %p155_p9, %p154_p7 }
  0x1b   : > { %s1904_s7 = scalar_select %p1642_p8, 1, 0 }
  0x1c   : > { %s1906_s8 = scalar_select %p1648_p12, 1, 0 }
  0x1d   : > { %1905 = sst [smem:[#allocation19_spill]] %s1904_s7  ;;  %p1652_p13 = pnand %p885_p10, %p162_p11 }
  0x1e   : > { %1907 = sst [smem:[#allocation20_spill]] %s1906_s8  ;;  %s1520_s13 = smov [#allocation8]  }
  0x1f   : > { %s1909_s3 = sld [smem:[#allocation27_spill]]  ;;  %p1135_p0 = pneg %p1652_p13 }
  0x20   : > { %s178_s14 = sshll.u32 %s1520_s13, 4  ;;  %s1879_s18 = smov 64   ;;  %s179_s14 = int_to_ptr.vmem [resolvable:$true] %s178_s14 }
  0x21   : > { %p1136_p2 = pnand %p1135_p0, %p58_p1  ;;  %s1881_s21 = smov 4  }
  0x22   : > { %s32_s30 = sadd.s32 1, %s1510_s26  ;;  %s35_s10 = sadd.s32 1, %s1514_s27 }
  0x23   : > { %p33_p3 = scmp.ge.s32.totalorder %s32_s30, 2  ;;  %s44_s11 = sadd.s32 1, %s1498_s23 }
  0x24   : > { %p51_p5 = scmp.ne.s32.totalorder %s1498_s23, %s1494_s22  ;;  %p52_p7 = scmp.eq.s32.totalorder %s1518_s28, 0 }
  0x25   : > { %s176_s12 = sshll.u32 %s1909_s3, 4  ;;  %s1944_s30 = smov (%p33_p3, %s32_s30), 0  ;;  %s177_s12 = int_to_ptr.hbm [resolvable:$true] %s176_s12 }
  0x26   : > { %1138 = dma.hbm_to_vmem [thread:$0]  (!%p1136_p2), %s177_s12, 1024, %s179_s14, [#allocation7], %s1879_s18, %s1879_s18, %s1881_s21  }
  0x27   : > { %1910 = sst [smem:[#allocation21_spill]] %s1944_s30  ;;  %s1946_s10 = smov (!%p33_p3, %s35_s10), %s1514_s27 }
  0x28   : > { %s1677_s13 = ssub.s32 %s1510_s26, %s1944_s30  ;;  %p1681_p9 = por %p52_p7, %p51_p5 }
  0x29   : > { %p37_p10 = scmp.ge.s32.totalorder %s1946_s10, 2  ;;  %p68_p11 = scmp.eq.s32.totalorder %s1677_s13, 0 }
  0x2a   : > { %s138_s14 = sadd.s32 1, %s1474_s17  ;;  %p1151_p0 = scmp.lt.s32.totalorder %s1518_s28, 4 }
  0x2b   : > { %s1948_s10 = smov (%p37_p10, %s1946_s10), 0  ;;  %s192_s18 = sand.u32 1, %s1498_s23  }
  0x2c   : > { %1912 = sst [smem:[#allocation22_spill]] %s1948_s10  ;;  %s1003_s21 = sshll.u32 %s1514_s27, 5 }
  0x2d   : > { %s39_s3 = ssub.s32 %s1514_s27, %s1948_s10  ;;  %s888_s8 = sshll.u32 %s192_s18, 6 }
  0x2e   : > { %s41_s30 = sor.u32 %s1677_s13, %s39_s3  ;;  %p136_p2 = scmp.eq.s32.totalorder %s39_s3, 0 }
  0x2f   : > { %p42_p3 = scmp.eq.s32.totalorder %s41_s30, 0  ;;  %s201_s7 = sadd.s32 %s1510_s26, %s1003_s21 }
  0x30   : > { %s1696_s15 = scalar_select %p136_p2, %s1474_s17, %s138_s14  }
  0x31   : > { %s1699_s4 = scalar_select %p42_p3, %s1498_s23, %s44_s11  }
  0x32   : > { %1913 = sst [smem:[#allocation23_spill]] %s1696_s15  ;;  %s891_s25 = sshll.u32 %s201_s7, 2 }
  0x33   : > { %1914 = sst [smem:[#allocation24_spill]] %s1699_s4  ;;  %s196_s2 = scalar_lea.vmem [#allocation3], %s888_s8 }
  0x34   : > { %s206_s10 = sshll.u32 %s196_s2, 4  ;;  %s1915_s0 = sld [smem:[#allocation25_spill]]  ;;  %s207_s10 = int_to_ptr.vmem [resolvable:$true] %s206_s10 }
  0x35   : > { %p1140_p5 = pnand %p1151_p0, %p1681_p9  ;;  %s193_s11 = scalar_lea.sflag [#allocation4], %s192_s18 }
  0x36   : > { %s1523_s4 = smov 128   ;;  %s1916_s23 = smov 4  }
  0x37   : > { %s1917_s21 = smov 64   ;;  %s216_s7 = sand.u32 1, %s1518_s28  }
  0x38   : > { %s70_s8 = sadd.s32 1, %s1486_s20  ;;  %p77_p10 = scmp.ne.s32.totalorder %s1486_s20, %s1482_s19 }
  0x39   : > { %s1718_s2 = scalar_select %p68_p11, %s1486_s20, %s70_s8  }
  0x3a   : > { %s203_s27 = scalar_lea.hbm %s1915_s0, %s891_s25  ;;  %p79_p2 = por %p77_p10, %p52_p7 }
  0x3b   : > { %s204_s14 = sshll.u32 %s203_s27, 4  ;;  %s218_s25 = sand.u32 1, %s1486_s20   ;;  %s205_s14 = int_to_ptr.hbm [resolvable:$true] %s204_s14 }
  0x3c   : > { %1142 = dma.hbm_to_vmem [thread:$0]  (!%p1140_p5), %s205_s14, 1024, %s207_s10, %s193_s11, %s1523_s4, %s1917_s21, %s1916_s23  }
  0x3d   : > { %s1004_s27 = sshll.u32 %s1510_s26, 6  ;;  %s892_s12 = sshll.u32 %s218_s25, 6 }
  0x3e   : > { %s225_s18 = scalar_lea.hbm %s1875_s1, %s1004_s27  ;;  %s220_s15 = scalar_lea.vmem [#allocation6], %s892_s12 }
  0x3f   : > { %s226_s0 = sshll.u32 %s225_s18, 4  ;;  %s228_s17 = sshll.u32 %s220_s15, 4  ;;  %s227_s0 = int_to_ptr.hbm [resolvable:$true] %s226_s0  ;;  %s229_s17 = int_to_ptr.vmem [resolvable:$true] %s228_s17 }
  0x40   : > { %p1143_p9 = pnand %p1151_p0, %p79_p2  ;;  %s217_s4 = scalar_lea.sflag [#allocation7], %s216_s7 }
  0x41   : > { %240 = sbr.rel (%p1652_p13) target bundleno = 509 (0x1fd), region = 36  ;;  %s242_s10 = sand.u32 (!%p1652_p13), 1, %s1494_s22  }
  0x42   : > { %1145 = dma.hbm_to_vmem [thread:$0]  (!%p1143_p9), %s227_s0, 1024, %s229_s17, %s217_s4, %s1917_s21, %s1917_s21, %s1916_s23  }
  0x43   : > { %s896_s13 = sshll.u32 (!%p1652_p13), %s242_s10, 6  ;;  %s243_s14 = scalar_lea.sflag (!%p1652_p13), [#allocation4], %s242_s10 }
  0x44   : > { %s1735_s11 = scalar_lea.vmem (!%p1652_p13), [#allocation3], %s896_s13 }
  0x46   : > { %1449 = dma.done.wait (%p1629_p4), %s243_s14, 1024  }
  0x47   : > { %1451 = vsyncadd (%p1629_p4), %s243_s14, 4294966272  ;;  %s252_s15 = sand.u32 1, %s1619_s29   ;;  %s254_s0 = sand.u32 1, %s1482_s19  }
  0x48   : > { %s897_s17 = sshll.u32 %s254_s0, 6  ;;  %s253_s23 = scalar_lea.sflag [#allocation7], %s252_s15 }
  0x49   : > { %s1743_s9 = scalar_lea.vmem [#allocation6], %s897_s17 }
  0x4a   : > { %1453 = dma.done.wait (%p1636_p6), %s253_s23, 1024  }
  0x4b   : > { %1455 = vsyncadd (%p1636_p6), %s253_s23, 4294966272 }
  0x4c   : > { %1457 = dma.done.wait (%p58_p1), [#allocation7], 1024  }
  0x4d   : > { %1459 = vsyncadd (%p58_p1), [#allocation7], 4294966272  ;;  %s289_s5 = sand.u32 1, %s1470_s16   ;;  %p900_p4 = scmp.ne.s32.totalorder %s1502_s24, 0 }
  0x4e   : > { %s899_s21 = sshll.u32 %s289_s5, 6 }
  0x4f   : > { %s1756_s7 = scalar_lea.vmem [#allocation9], %s899_s21  ;;  %298 = sbr.rel (%p900_p4) target bundleno = 101 (0x65), region = 52 }
  0x54   : > { %v1524_v0 = vmov 0.0  }
  0x55   : > { %299 = vst [vmem:[#allocation2 + $0x30] sm:$0xff] %v1524_v0 }
  0x56   : > { %300 = vst [vmem:[#allocation2] sm:$0xff] %v1524_v0 }
  0x57   : > { %301 = vst [vmem:[#allocation2 + $0x58] sm:$0xff] %v1524_v0 }
  0x58   : > { %302 = vst [vmem:[#allocation2 + $0x18] sm:$0xff] %v1524_v0 }
  0x59   : > { %303 = vst [vmem:[#allocation2 + $0x50] sm:$0xff] %v1524_v0 }
  0x5a   : > { %304 = vst [vmem:[#allocation2 + $0x68] sm:$0xff] %v1524_v0 }
  0x5b   : > { %305 = vst [vmem:[#allocation2 + $0x8] sm:$0xff] %v1524_v0 }
  0x5c   : > { %306 = vst [vmem:[#allocation2 + $0x48] sm:$0xff] %v1524_v0 }
  0x5d   : > { %307 = vst [vmem:[#allocation2 + $0x40] sm:$0xff] %v1524_v0 }
  0x5e   : > { %308 = vst [vmem:[#allocation2 + $0x20] sm:$0xff] %v1524_v0 }
  0x5f   : > { %309 = vst [vmem:[#allocation2 + $0x10] sm:$0xff] %v1524_v0 }
  0x60   : > { %310 = vst [vmem:[#allocation2 + $0x38] sm:$0xff] %v1524_v0 }
  0x61   : > { %311 = vst [vmem:[#allocation2 + $0x60] sm:$0xff] %v1524_v0 }
  0x62   : > { %312 = vst [vmem:[#allocation2 + $0x70] sm:$0xff] %v1524_v0 }
  0x63   : > { %313 = vst [vmem:[#allocation2 + $0x78] sm:$0xff] %v1524_v0 }
  0x64   : > { %314 = vst [vmem:[#allocation2 + $0x28] sm:$0xff] %v1524_v0 }
  0x65 PF: > { %v1020_v1 = vld [vmem:[%s1743_s9 + $0x38] sm:$0xff]  ;;  %v1019_v2 = vld [vmem:[%s1743_s9 + $0x30] sm:$0xff]  ;;  %v1018_v3 = vld [vmem:[%s1743_s9 + $0x28] sm:$0xff]  ;;  %p965_p1 = scmp.ne.s32.totalorder %s1502_s24, 1 }
  0x66   : > { %459 = vmatpush.bf16.msra.mxu0 %v1020_v1  ;;  %1077 = vmatpush.bf16.msra.mxu1 %v1020_v1  ;;  %v1017_v4 = vld [vmem:[%s1743_s9 + $0x20] sm:$0xff]  ;;  %v1016_v5 = vld [vmem:[%s1743_s9 + $0x18] sm:$0xff]  ;;  %v1015_v6 = vld [vmem:[%s1743_s9 + $0x10] sm:$0xff]  ;;  %s1918_s6 = sld [smem:[#allocation26_spill]] (!%p965_p1) }
  0x67   : > { %1078 = vmatpush.bf16.msra.mxu2 %v1020_v1  ;;  %1079 = vmatpush.bf16.msra.mxu3 %v1020_v1  ;;  %v1014_v7 = vld [vmem:[%s1743_s9 + $0x8] sm:$0xff]  ;;  %v1013_v8 = vld [vmem:[%s1743_s9] sm:$0xff]  ;;  %v1007_v10 = vld [vmem:[%s1735_s11 + $0x10] sm:$0xff] }
  0x68   : > { %v1005_v9 = vld [vmem:[%s1735_s11] sm:$0xff]  ;;  %v1011_v12 = vld [vmem:[%s1735_s11 + $0x30] sm:$0xff]  ;;  %v1006_v13 = vld [vmem:[%s1735_s11 + $0x8] sm:$0xff] }
  0x69   : > { %v1009_v11 = vld [vmem:[%s1735_s11 + $0x20] sm:$0xff]  ;;  %v1008_v14 = vld [vmem:[%s1735_s11 + $0x18] sm:$0xff]  ;;  %v1010_v15 = vld [vmem:[%s1735_s11 + $0x28] sm:$0xff] }
  0x6a   : > { %460 = vmatpush.bf16.msra.mxu0 %v1019_v2  ;;  %1080 = vmatpush.bf16.msra.mxu1 %v1019_v2  ;;  %v1012_v16 = vld [vmem:[%s1735_s11 + $0x38] sm:$0xff]  ;;  %v315_v17 = vld [vmem:[#allocation2 + $0x30] sm:$0xff]  ;;  %v323_v23 = vld [vmem:[#allocation2 + $0x40] sm:$0xff] }
  0x6b   : > { %1081 = vmatpush.bf16.msra.mxu2 %v1019_v2  ;;  %1082 = vmatpush.bf16.msra.mxu3 %v1019_v2  ;;  %v319_v18 = vld [vmem:[#allocation2 + $0x50] sm:$0xff]  ;;  %v327_v24 = vld [vmem:[#allocation2 + $0x60] sm:$0xff]  ;;  %v320_v26 = vld [vmem:[#allocation2 + $0x68] sm:$0xff] }
  0x6c   : > { %v316_v25 = vld [vmem:[#allocation2] sm:$0xff]  ;;  %v328_v36 = vld [vmem:[#allocation2 + $0x70] sm:$0xff]  ;;  %v317_v37 = vld [vmem:[#allocation2 + $0x58] sm:$0xff] }
  0x6d   : > { %v324_v35 = vld [vmem:[#allocation2 + $0x20] sm:$0xff]  ;;  %v321_v38 = vld [vmem:[#allocation2 + $0x8] sm:$0xff]  ;;  %v325_v47 = vld [vmem:[#allocation2 + $0x10] sm:$0xff] }
  0x6e   : > { %461 = vmatpush.bf16.msra.mxu0 %v1018_v3  ;;  %1083 = vmatpush.bf16.msra.mxu1 %v1018_v3  ;;  %v329_v48 = vld [vmem:[#allocation2 + $0x78] sm:$0xff]  ;;  %v322_v50 = vld [vmem:[#allocation2 + $0x48] sm:$0xff] }
  0x6f   : > { %1084 = vmatpush.bf16.msra.mxu2 %v1018_v3  ;;  %1085 = vmatpush.bf16.msra.mxu3 %v1018_v3  ;;  %v318_v49 = vld [vmem:[#allocation2 + $0x18] sm:$0xff]  ;;  %v330_v60 = vld [vmem:[#allocation2 + $0x28] sm:$0xff] }
  0x70   : > { %v326_v59 = vld [vmem:[#allocation2 + $0x38] sm:$0xff] }
  0x72   : > { %462 = vmatpush.bf16.msra.mxu0 %v1017_v4  ;;  %1086 = vmatpush.bf16.msra.mxu1 %v1017_v4 }
  0x73   : > { %1087 = vmatpush.bf16.msra.mxu2 %v1017_v4  ;;  %1088 = vmatpush.bf16.msra.mxu3 %v1017_v4 }
  0x76   : > { %463 = vmatpush.bf16.msra.mxu0 %v1016_v5  ;;  %1089 = vmatpush.bf16.msra.mxu1 %v1016_v5 }
  0x77   : > { %1090 = vmatpush.bf16.msra.mxu2 %v1016_v5  ;;  %1091 = vmatpush.bf16.msra.mxu3 %v1016_v5 }
  0x7a   : > { %464 = vmatpush.bf16.msra.mxu0 %v1015_v6  ;;  %1092 = vmatpush.bf16.msra.mxu1 %v1015_v6 }
  0x7b   : > { %1093 = vmatpush.bf16.msra.mxu2 %v1015_v6  ;;  %1094 = vmatpush.bf16.msra.mxu3 %v1015_v6 }
  0x7e   : > { %465 = vmatpush.bf16.msra.mxu0 %v1014_v7  ;;  %1095 = vmatpush.bf16.msra.mxu1 %v1014_v7 }
  0x7f   : > { %1096 = vmatpush.bf16.msra.mxu2 %v1014_v7  ;;  %1097 = vmatpush.bf16.msra.mxu3 %v1014_v7 }
  0x82   : > { %466 = vmatpush.bf16.msra.mxu0 %v1013_v8  ;;  %1098 = vmatpush.bf16.msra.mxu1 %v1013_v8 }
  0x83   : > { %1099 = vmatpush.bf16.msra.mxu2 %v1013_v8  ;;  %1100 = vmatpush.bf16.msra.mxu3 %v1013_v8 }
  0x85   : > { %467 = vmatmul.bf16.vlgmr.msra.gmra.mxu0 %v1005_v9  ;;  %477 = vmatmul.bf16.vlgmr.msra.gmra.mxu1 %v1007_v10 }
  0x86   : > { %487 = vmatmul.bf16.vlgmr.msra.gmra.mxu2 %v1009_v11  ;;  %497 = vmatmul.bf16.vlgmr.msra.gmra.mxu3 %v1011_v12 }
  0x95   : > { %472 = vmatmul.bf16.gmra.mxu0 %v1006_v13  ;;  %482 = vmatmul.bf16.gmra.mxu1 %v1008_v14 }
  0x96   : > { %492 = vmatmul.bf16.gmra.mxu2 %v1010_v15  ;;  %502 = vmatmul.bf16.gmra.mxu3 %v1012_v16 }
 0x102   : > { %v468_v19 = vpop.f32.mrf.mxu0  ;;  %v478_v20 = vpop.f32.mrf.mxu1 }
 0x103   : > { %v508_v21 = vadd.f32 %v468_v19, %v315_v17  ;;  %v512_v22 = vadd.f32 %v478_v20, %v319_v18 }
 0x105   : > { %524 = vst [vmem:[#allocation2 + $0x30] sm:$0xff] %v508_v21 }
 0x106   : > { %528 = vst [vmem:[#allocation2 + $0x50] sm:$0xff] %v512_v22 }
 0x109   : > { %v488_v27 = vpop.f32.mrf.mxu2  ;;  %v498_v28 = vpop.f32.mrf.mxu3 }
 0x10a   : > { %v516_v29 = vadd.f32 %v488_v27, %v323_v23  ;;  %v520_v30 = vadd.f32 %v498_v28, %v327_v24  ;;  %v470_v31 = vpop.f32.mrf.mxu0  ;;  %v480_v32 = vpop.f32.mrf.mxu1 }
 0x10b   : > { %v509_v33 = vadd.f32 %v470_v31, %v316_v25  ;;  %v513_v34 = vadd.f32 %v480_v32, %v320_v26 }
 0x10c   : > { %532 = vst [vmem:[#allocation2 + $0x40] sm:$0xff] %v516_v29 }
 0x10d   : > { %536 = vst [vmem:[#allocation2 + $0x60] sm:$0xff] %v520_v30 }
 0x10e   : > { %525 = vst [vmem:[#allocation2] sm:$0xff] %v509_v33 }
 0x10f   : > { %529 = vst [vmem:[#allocation2 + $0x68] sm:$0xff] %v513_v34 }
 0x111   : > { %v490_v39 = vpop.f32.mrf.mxu2  ;;  %v500_v40 = vpop.f32.mrf.mxu3 }
 0x112   : > { %v517_v41 = vadd.f32 %v490_v39, %v324_v35  ;;  %v521_v42 = vadd.f32 %v500_v40, %v328_v36  ;;  %v473_v43 = vpop.f32.mrf.mxu0  ;;  %v483_v44 = vpop.f32.mrf.mxu1 }
 0x113   : > { %v510_v45 = vadd.f32 %v473_v43, %v317_v37  ;;  %v514_v46 = vadd.f32 %v483_v44, %v321_v38 }
 0x114   : > { %533 = vst [vmem:[#allocation2 + $0x20] sm:$0xff] %v517_v41 }
 0x115   : > { %537 = vst [vmem:[#allocation2 + $0x70] sm:$0xff] %v521_v42 }
 0x116   : > { %526 = vst [vmem:[#allocation2 + $0x58] sm:$0xff] %v510_v45 }
 0x117   : > { %530 = vst [vmem:[#allocation2 + $0x8] sm:$0xff] %v514_v46 }
 0x119   : > { %v493_v51 = vpop.f32.mrf.mxu2  ;;  %v503_v52 = vpop.f32.mrf.mxu3 }
 0x11a   : > { %v518_v53 = vadd.f32 %v493_v51, %v325_v47  ;;  %v522_v54 = vadd.f32 %v503_v52, %v329_v48  ;;  %v475_v55 = vpop.f32.mrf.mxu0  ;;  %v485_v56 = vpop.f32.mrf.mxu1 }
 0x11b   : > { %v511_v57 = vadd.f32 %v475_v55, %v318_v49  ;;  %v515_v58 = vadd.f32 %v485_v56, %v322_v50 }
 0x11c   : > { %534 = vst [vmem:[#allocation2 + $0x10] sm:$0xff] %v518_v53 }
 0x11d   : > { %538 = vst [vmem:[#allocation2 + $0x78] sm:$0xff] %v522_v54 }
 0x11e   : > { %527 = vst [vmem:[#allocation2 + $0x18] sm:$0xff] %v511_v57 }
 0x11f   : > { %531 = vst [vmem:[#allocation2 + $0x48] sm:$0xff] %v515_v58 }
 0x121   : > { %v495_v61 = vpop.f32.mrf.mxu2  ;;  %v505_v62 = vpop.f32.mrf.mxu3  ;;  %543 = sbr.rel (%p965_p1) target bundleno = 487 (0x1e7), region = 56 }
 0x122   : > { %v519_v63 = vadd.f32 %v495_v61, %v326_v59  ;;  %v523_v0 = vadd.f32 %v505_v62, %v330_v60 }
 0x124   : > { %535 = vst [vmem:[#allocation2 + $0x38] sm:$0xff] %v519_v63 }
 0x125   : > { %539 = vst [vmem:[#allocation2 + $0x28] sm:$0xff] %v523_v0 }
 0x126   : > { %v1028_v1 = vld [vmem:[#allocation8 + $0x38] sm:$0xff]  ;;  %v1027_v2 = vld [vmem:[#allocation8 + $0x30] sm:$0xff]  ;;  %v1026_v3 = vld [vmem:[#allocation8 + $0x28] sm:$0xff] }
 0x127   : > { %668 = vmatpush.bf16.msra.mxu0 %v1028_v1  ;;  %1101 = vmatpush.bf16.msra.mxu1 %v1028_v1  ;;  %v1025_v4 = vld [vmem:[#allocation8 + $0x20] sm:$0xff]  ;;  %v1024_v5 = vld [vmem:[#allocation8 + $0x18] sm:$0xff]  ;;  %v1023_v7 = vld [vmem:[#allocation8 + $0x10] sm:$0xff] }
 0x128   : > { %1102 = vmatpush.bf16.msra.mxu2 %v1028_v1  ;;  %1103 = vmatpush.bf16.msra.mxu3 %v1028_v1  ;;  %v1779_v6 = vld [vmem:[%s1918_s6] ss:$0 sm:$0xff]  ;;  %v544_v8 = vld [vmem:[#allocation2 + $0x30] sm:$0xff]  ;;  %v549_v11 = vld [vmem:[#allocation2 + $0x68] sm:$0xff] }
 0x129   : > { %v545_v9 = vld [vmem:[#allocation2] sm:$0xff]  ;;  %v548_v10 = vld [vmem:[#allocation2 + $0x50] sm:$0xff]  ;;  %v564_v16 = vadd.f32 %v1779_v6, %v544_v8  ;;  %v569_v19 = vadd.f32 %v1779_v6, %v549_v11  ;;  %v1022_v21 = vld [vmem:[#allocation8 + $0x8] sm:$0xff] }
 0x12a   : > { %v552_v12 = vld [vmem:[#allocation2 + $0x40] sm:$0xff]  ;;  %v557_v15 = vld [vmem:[#allocation2 + $0x70] sm:$0xff]  ;;  %v565_v17 = vadd.f32 %v1779_v6, %v545_v9  ;;  %v568_v18 = vadd.f32 %v1779_v6, %v548_v10  ;;  %v546_v38 = vld [vmem:[#allocation2 + $0x58] sm:$0xff] }
 0x12b   : > { %669 = vmatpush.bf16.msra.mxu0 %v1027_v2  ;;  %1104 = vmatpush.bf16.msra.mxu1 %v1027_v2  ;;  %v553_v13 = vld [vmem:[#allocation2 + $0x20] sm:$0xff]  ;;  %v572_v20 = vadd.f32 %v1779_v6, %v552_v12  ;;  %v577_v24 = vadd.f32 %v1779_v6, %v557_v15  ;;  %v580_v25 = vmax.f32 %v564_v16, 0.0  ;;  %v585_v28 = vmax.f32 %v569_v19, 0.0  ;;  %v547_v39 = vld [vmem:[#allocation2 + $0x18] sm:$0xff]  ;;  %v550_v40 = vld [vmem:[#allocation2 + $0x8] sm:$0xff] }
 0x12c   : > { %1105 = vmatpush.bf16.msra.mxu2 %v1027_v2  ;;  %1106 = vmatpush.bf16.msra.mxu3 %v1027_v2  ;;  %v556_v14 = vld [vmem:[#allocation2 + $0x60] sm:$0xff]  ;;  %v573_v22 = vadd.f32 %v1779_v6, %v553_v13  ;;  %v581_v26 = vmax.f32 %v565_v17, 0.0  ;;  %v584_v27 = vmax.f32 %v568_v18, 0.0  ;;  %v551_v41 = vld [vmem:[#allocation2 + $0x48] sm:$0xff]  ;;  %v554_v42 = vld [vmem:[#allocation2 + $0x10] sm:$0xff]  ;;  %v566_v46 = vadd.f32 %v1779_v6, %v546_v38 }
 0x12d   : > { %v576_v23 = vadd.f32 %v1779_v6, %v556_v14  ;;  %v1021_v29 = vld [vmem:[#allocation8] sm:$0xff]  ;;  %v588_v30 = vmax.f32 %v572_v20, 0.0  ;;  %v593_v33 = vmax.f32 %v577_v24, 0.0  ;;  %v555_v43 = vld [vmem:[#allocation2 + $0x38] sm:$0xff]  ;;  %v559_v45 = vld [vmem:[#allocation2 + $0x28] sm:$0xff]  ;;  %v567_v47 = vadd.f32 %v1779_v6, %v547_v39 }
 0x12e   : > { %v589_v31 = vmax.f32 %v573_v22, 0.0  ;;  %v596_v34 = vpack.c.bf16 %v581_v26, %v580_v25  ;;  %v598_v35 = vpack.c.bf16 %v585_v28, %v584_v27  ;;  %v558_v44 = vld [vmem:[#allocation2 + $0x78] sm:$0xff]  ;;  %v570_v48 = vadd.f32 %v1779_v6, %v550_v40 }
 0x12f   : > { %670 = vmatpush.bf16.msra.mxu0 %v1026_v3  ;;  %1107 = vmatpush.bf16.msra.mxu1 %v1026_v3  ;;  %v592_v32 = vmax.f32 %v576_v23, 0.0  ;;  %v571_v49 = vadd.f32 %v1779_v6, %v551_v41  ;;  %v574_v50 = vadd.f32 %v1779_v6, %v554_v42  ;;  %v575_v51 = vadd.f32 %v1779_v6, %v555_v43 }
 0x130   : > { %1108 = vmatpush.bf16.msra.mxu2 %v1026_v3  ;;  %1109 = vmatpush.bf16.msra.mxu3 %v1026_v3  ;;  %v600_v36 = vpack.c.bf16 %v589_v31, %v588_v30  ;;  %v578_v52 = vadd.f32 %v1779_v6, %v558_v44  ;;  %v579_v53 = vadd.f32 %v1779_v6, %v559_v45  ;;  %v582_v54 = vmax.f32 %v566_v46, 0.0 }
 0x131   : > { %v602_v37 = vpack.c.bf16 %v593_v33, %v592_v32  ;;  %v583_v55 = vmax.f32 %v567_v47, 0.0  ;;  %v586_v56 = vmax.f32 %v570_v48, 0.0  ;;  %v587_v57 = vmax.f32 %v571_v49, 0.0 }
 0x132   : > { %v590_v58 = vmax.f32 %v574_v50, 0.0  ;;  %v591_v59 = vmax.f32 %v575_v51, 0.0  ;;  %v594_v60 = vmax.f32 %v578_v52, 0.0  ;;  %v595_v61 = vmax.f32 %v579_v53, 0.0 }
 0x133   : > { %671 = vmatpush.bf16.msra.mxu0 %v1025_v4  ;;  %1110 = vmatpush.bf16.msra.mxu1 %v1025_v4  ;;  %v597_v62 = vpack.c.bf16 %v583_v55, %v582_v54  ;;  %v599_v63 = vpack.c.bf16 %v587_v57, %v586_v56 }
 0x134   : > { %1111 = vmatpush.bf16.msra.mxu2 %v1025_v4  ;;  %1112 = vmatpush.bf16.msra.mxu3 %v1025_v4  ;;  %v601_v0 = vpack.c.bf16 %v591_v59, %v590_v58  ;;  %v603_v1 = vpack.c.bf16 %v595_v61, %v594_v60 }
 0x137   : > { %672 = vmatpush.bf16.msra.mxu0 %v1024_v5  ;;  %1113 = vmatpush.bf16.msra.mxu1 %v1024_v5 }
 0x138   : > { %1114 = vmatpush.bf16.msra.mxu2 %v1024_v5  ;;  %1115 = vmatpush.bf16.msra.mxu3 %v1024_v5 }
 0x13b   : > { %673 = vmatpush.bf16.msra.mxu0 %v1023_v7  ;;  %1116 = vmatpush.bf16.msra.mxu1 %v1023_v7 }
 0x13c   : > { %1117 = vmatpush.bf16.msra.mxu2 %v1023_v7  ;;  %1118 = vmatpush.bf16.msra.mxu3 %v1023_v7 }
 0x13f   : > { %674 = vmatpush.bf16.msra.mxu0 %v1022_v21  ;;  %1119 = vmatpush.bf16.msra.mxu1 %v1022_v21 }
 0x140   : > { %1120 = vmatpush.bf16.msra.mxu2 %v1022_v21  ;;  %1121 = vmatpush.bf16.msra.mxu3 %v1022_v21 }
 0x143   : > { %675 = vmatpush.bf16.msra.mxu0 %v1021_v29  ;;  %1122 = vmatpush.bf16.msra.mxu1 %v1021_v29 }
 0x144   : > { %1123 = vmatpush.bf16.msra.mxu2 %v1021_v29  ;;  %1124 = vmatpush.bf16.msra.mxu3 %v1021_v29 }
 0x146   : > { %676 = vmatmul.bf16.vlgmr.msra.gmra.mxu0 %v596_v34  ;;  %686 = vmatmul.bf16.vlgmr.msra.gmra.mxu1 %v598_v35 }
 0x147   : > { %696 = vmatmul.bf16.vlgmr.msra.gmra.mxu2 %v600_v36  ;;  %706 = vmatmul.bf16.vlgmr.msra.gmra.mxu3 %v602_v37 }
 0x156   : > { %681 = vmatmul.bf16.gmra.mxu0 %v597_v62  ;;  %691 = vmatmul.bf16.gmra.mxu1 %v599_v63 }
 0x157   : > { %701 = vmatmul.bf16.gmra.mxu2 %v601_v0  ;;  %711 = vmatmul.bf16.gmra.mxu3 %v603_v1 }
 0x1c3   : > { %v677_v2 = vpop.f32.mrf.mxu0  ;;  %v687_v3 = vpop.f32.mrf.mxu1 }
 0x1ca   : > { %v697_v4 = vpop.f32.mrf.mxu2  ;;  %v707_v5 = vpop.f32.mrf.mxu3 }
 0x1cb   : > { %v679_v6 = vpop.f32.mrf.mxu0  ;;  %v689_v7 = vpop.f32.mrf.mxu1 }
 0x1cc   : > { %v1033_v8 = vpack.c.bf16 %v679_v6, %v677_v2  ;;  %v1043_v9 = vpack.c.bf16 %v689_v7, %v687_v3 }
 0x1ce   : > { %1034 = vst [vmem:[%s1756_s7] sm:$0xff] %v1033_v8  }
 0x1cf   : > { %1071 = vst [vmem:[%s1756_s7 + $0x10] sm:$0xff] %v1043_v9  }
 0x1d2   : > { %v699_v10 = vpop.f32.mrf.mxu2  ;;  %v709_v11 = vpop.f32.mrf.mxu3 }
 0x1d3   : > { %v1053_v12 = vpack.c.bf16 %v699_v10, %v697_v4  ;;  %v1063_v13 = vpack.c.bf16 %v709_v11, %v707_v5  ;;  %v682_v14 = vpop.f32.mrf.mxu0  ;;  %v692_v15 = vpop.f32.mrf.mxu1 }
 0x1d5   : > { %1073 = vst [vmem:[%s1756_s7 + $0x20] sm:$0xff] %v1053_v12  }
 0x1d6   : > { %1075 = vst [vmem:[%s1756_s7 + $0x30] sm:$0xff] %v1063_v13  }
 0x1da   : > { %v702_v16 = vpop.f32.mrf.mxu2  ;;  %v712_v17 = vpop.f32.mrf.mxu3 }
 0x1db   : > { %v684_v18 = vpop.f32.mrf.mxu0  ;;  %v694_v19 = vpop.f32.mrf.mxu1 }
 0x1dc   : > { %v1038_v20 = vpack.c.bf16 %v684_v18, %v682_v14  ;;  %v1048_v21 = vpack.c.bf16 %v694_v19, %v692_v15 }
 0x1de   : > { %1070 = vst [vmem:[%s1756_s7 + $0x8] sm:$0xff] %v1038_v20  }
 0x1df   : > { %1072 = vst [vmem:[%s1756_s7 + $0x18] sm:$0xff] %v1048_v21  }
 0x1e2   : > { %v704_v22 = vpop.f32.mrf.mxu2  ;;  %v714_v23 = vpop.f32.mrf.mxu3 }
 0x1e3   : > { %v1058_v24 = vpack.c.bf16 %v704_v22, %v702_v16  ;;  %v1068_v25 = vpack.c.bf16 %v714_v23, %v712_v17 }
 0x1e5   : > { %1074 = vst [vmem:[%s1756_s7 + $0x28] sm:$0xff] %v1058_v24  }
 0x1e6   : > { %1076 = vst [vmem:[%s1756_s7 + $0x38] sm:$0xff] %v1068_v25  }
 0x1e7 PF: > { %s1919_s8 = sld [smem:[#allocation17_spill]]  ;;  %s762_s4 = sshll.u32 %s1756_s7, 4  ;;  %s763_s4 = int_to_ptr.vmem [resolvable:$true] %s762_s4 }
 0x1e8   : > { %s1921_s30 = sld [smem:[#allocation28_spill]]  ;;  %s750_s13 = scalar_lea.sflag [#allocation5], %s289_s5 }
 0x1ed   : > { %s1029_s27 = sshll.u32 %s1919_s8, 6 }
 0x1ee   : > { %s761_s18 = scalar_lea.hbm %s1921_s30, %s1029_s27  ;;  %s1384_s17 = scalar_lea.hbm %s1921_s30, 128 }
 0x1ef   : > { %s764_s10 = sshll.u32 %s761_s18, 4  ;;  %s765_s10 = int_to_ptr.hbm [resolvable:$true] %s764_s10 }
 0x1f0   : > { %s1378_s14 = sshra.s32 %s765_s10, 4  ;;  %s1379_s14 = int_to_ptr.hbm [resolvable:$true] %s1378_s14 }
 0x1f1   : > { %s1380_s11 = scalar_lea.hbm %s1379_s14, 64  ;;  %p1385_p11 = scmp.lt.s32.totalorder %s1379_s14, %s1921_s30 }
 0x1f2   : > { %p1381_p6 = scmp.ne.s32.totalorder %s1379_s14, %s1380_s11  ;;  %p1386_p0 = scmp.lt.s32.totalorder %s1384_s17, %s1380_s11 }
 0x1f4   : > { %p1382_p13 = pnand %p1381_p6, %p1642_p8  ;;  %p1387_p3 = por %p1386_p0, %p1385_p11 }
 0x1f6   : > { %p1383_p7 = pneg %p1382_p13 }
 0x1f8   : > { %p1388_p5 = pnand %p1387_p3, %p1383_p7 }
 0x1fa   : > { %1391 = shalt.err (!%p1388_p5)
}
 0x1fb   : > { %s1525_s5 = smov 64   ;;  %s1526_s21 = smov 4  }
 0x1fc   : > { %1133 = dma.vmem_to_hbm [thread:$0]  (%p1642_p8), %s763_s4, 1024, %s765_s10, %s750_s13, %s1525_s5, %s1525_s5, %s1526_s21  }
 0x1fd PF: > { %s1922_s7 = sld [smem:[#allocation14_spill]]  ;;  %p1153_p10 = scmp.ge.s32.totalorder %s1518_s28, 2 }
 0x1ff   : > { %p1147_p2 = pnand %p1153_p10, %p1648_p12 }
 0x201   : > { %p1148_p9 = pneg %p1147_p2 }
 0x203   : > { %s779_s29 = sand.u32 1, %s1922_s7  }
 0x204   : > { %s780_s6 = scalar_lea.sflag [#allocation5], %s779_s29 }
 0x205   : > { %1461 = dma.done.wait (%p1148_p9), %s780_s6, 1024  }
 0x206   : > { %1463 = vsyncadd (%p1148_p9), %s780_s6, 4294966272  ;;  %s23_s28 = sadd.s32 1, %s1518_s28   ;;  %s1925_s25 = sld [smem:[#allocation15_spill]] }
 0x207   : > { %p1827_p4 = scmp.ge.s32.totalorder %s23_s28, 6   ;;  %s1926_s17 = sld [smem:[#allocation23_spill]] }
 0x208   : > { %s1927_s27 = sld [smem:[#allocation16_spill]]  ;;  %s1932_s15 = smov %s1470_s16 }
 0x209   : > { %s1928_s23 = sld [smem:[#allocation24_spill]]  ;;  %s1934_s18 = smov %s1482_s19 }
 0x20a   : > { %s1929_s12 = sld [smem:[#allocation18_spill]]  ;;  %s1935_s19 = smov %s1486_s20 }
 0x20b   : > { %s1930_s3 = sld [smem:[#allocation21_spill]]  ;;  %s1936_s20 = smov %s1718_s2 }
 0x20c   : > { %s1931_s4 = sld [smem:[#allocation22_spill]]  ;;  %s1933_s16 = smov %s1925_s25 }
 0x20d   : > { %s1937_s21 = smov %s1494_s22  ;;  %s1939_s24 = smov %s1510_s26 }
 0x20e   : > { %s1938_s22 = smov %s1927_s27  ;;  %22 = sbr.rel (!%p1827_p4) target bundleno = 17 (0x11), region = 106 }
 0x210   : > { %s1940_s25 = smov %s1929_s12 }
 0x211   : > { %s1941_s26 = smov %s1930_s3 }
 0x212   : > { %s1942_s27 = smov %s1931_s4 }
 0x213   :  { %786 = vsyncpa [#allocation4], 1 }
 0x214   :  { %788 = vsyncpa [#allocation4 + $0x1], 1 }
 0x215   :  { %789 = vsyncpa [#allocation7], 1 }
 0x216   :  { %791 = vsyncpa [#allocation7 + $0x1], 1 }
 0x217   :  { %792 = vsyncpa [#allocation5], 1 }
 0x218   :  { %794 = vsyncpa [#allocation5 + $0x1], 1 }

</bundles_post_ra>
